<compile_context>
chip_gen: v6e
topology: v6e:2x2x1
jax: 0.10.0
libtpu: 0.0.40
codegen_flags: <defaults>
</compile_context>

<pallas_src>
import functools

import jax
import jax.numpy as jnp
from jax.experimental import pallas as pl
from jax.experimental.pallas import tpu as pltpu

EPS = 1e-6


# ----------------------------------------------------------------------------- helpers
def _tpu_vmem_capacity_bytes():
    try:
        return int(pltpu.get_tpu_info().vmem_capacity_bytes)
    except Exception:
        return 128 << 20  # conservative default (v5e/v6e)


def _vmem_budget_and_target():
    phys = _tpu_vmem_capacity_bytes()
    if phys <= (64 << 20):            # v7x: 64 MiB per TC -> stay well under it
        return 44 << 20, 1024
    return 100 << 20, 1024            # v5e / v6e: 128 MiB physical


def _fit_rows_to_budget(target_rows, H, c_pad, x_bytes, out_bytes, mm_bytes, budget):
    """Largest multiple-of-8 row count whose double-buffered tiles + resident W fit."""
    fixed = 2 * H * c_pad * mm_bytes + 8 * c_pad * 4 + 8 * H * 4 + (1 << 20)
    per_row = 2 * (H * x_bytes + c_pad * out_bytes)   # double-buffered x and out tiles
    max_rows = max((budget - fixed) // per_row, 8)
    rows = min(target_rows, max_rows)
    return max((rows // 8) * 8, 8)


def _choose_t_tile(T, target_rows):
    """Pick a multiple-of-8 tile.  Prefer an exact divisor of T in [target/2, target];
    otherwise return the target (caller zero-pads T).  Never falls back to full T."""
    T8 = ((T + 7) // 8) * 8
    if T8 <= target_rows:
        return T8
    start = max((target_rows // 8) * 8, 8)
    lo = max((target_rows // 2 // 8) * 8, 8)
    for cand in range(start, lo - 1, -8):
        if T % cand == 0:
            return cand
    return start  # no friendly divisor -> pad T up to a multiple of `start`


# ----------------------------------------------------------------------------- kernel
def last_layer_kernel(x_ref, scale_p1_ref, bias_ref, w_lin_ref, o_ref, *, mm_dtype):
    # ---- LayerNorm (no affine, biased variance, eps=1e-6), f32 math ----------
    xb = x_ref[0].astype(jnp.float32)                       # (T_TILE, H)
    mean = jnp.mean(xb, axis=-1, keepdims=True)              # (T_TILE, 1)
    mean_sq = jnp.mean(xb * xb, axis=-1, keepdims=True)      # overlaps with the mean reduce
    var = jnp.maximum(mean_sq - mean * mean, 0.0)
    xn = (xb - mean) * jax.lax.rsqrt(var + EPS)               # (T_TILE, H)

    # ---- modulate: scale only (shift is folded into the per-batch bias) ------
    y = xn * scale_p1_ref[0]                                  # broadcast (1, H)

    # ---- final projection on the MXU (f32 accumulate) ------------------------
    out = jnp.dot(y.astype(mm_dtype), w_lin_ref[...],
                  preferred_element_type=jnp.float32)         # (T_TILE, C_pad)
    o_ref[0] = (out + bias_ref[0]).astype(o_ref.dtype)        # bias_ref[0]: (1, C_pad) f32


# ----------------------------------------------------------------------------- wrapper
def prepare_last_layer_params(w_mod, b_mod, w_lin, b_lin, *, use_bf16_matmul=True):
    """Build once at init: padded / cast weights never re-materialized per forward."""
    H, C = w_lin.shape
    c_pad = ((C + 127) // 128) * 128
    mm_dtype = jnp.bfloat16 if use_bf16_matmul else jnp.float32
    if c_pad == C:
        w_lin_p = w_lin.astype(mm_dtype)
    else:
        w_lin_p = jnp.pad(w_lin.astype(mm_dtype), ((0, 0), (0, c_pad - C)))
    return {
        "w_mod": w_mod.astype(jnp.float32),
        "b_mod": b_mod.astype(jnp.float32),
        "w_lin_f32": w_lin.astype(jnp.float32),
        "b_lin_f32": b_lin.astype(jnp.float32),
        "w_lin_p": w_lin_p,
        "c_pad": c_pad,
        "C": C,
        "H": H,
        "mm_dtype": mm_dtype,
    }


def last_layer_forward(params, x, vec, *, t_tile=None, out_dtype=jnp.float32,
                       return_padded=False):
    """x: (B, T, H) f32 or bf16; vec: (B, H). Returns (B, T, C_out) in `out_dtype`
    (or the padded (B, T_pad, c_pad) slab if return_padded=True)."""
    B, T, H = x.shape
    assert H == params["H"]
    C, c_pad, mm_dtype = params["C"], params["c_pad"], params["mm_dtype"]

    # ---- adaLN modulation hoisted to XLA (f32) --------------------------------
    vec_f = vec.astype(jnp.float32)
    silu = vec_f * jax.nn.sigmoid(vec_f)
    mod = silu @ params["w_mod"] + params["b_mod"]            # (B, 2H)
    shift, scale = mod[:, :H], mod[:, H:]
    scale_p1 = (1.0 + scale).reshape(B, 1, H)                 # (B, 1, H) f32

    # ---- fold shift into a per-batch bias (exact, f32) ------------------------
    bias_b = shift @ params["w_lin_f32"] + params["b_lin_f32"]     # (B, C)
    if c_pad != C:
        bias_b = jnp.pad(bias_b, ((0, 0), (0, c_pad - C)))
    bias_b = bias_b.reshape(B, 1, c_pad)

    # ---- generation-aware tiling ----------------------------------------------
    x_bytes = jnp.dtype(x.dtype).itemsize
    out_bytes = jnp.dtype(out_dtype).itemsize
    mm_bytes = jnp.dtype(mm_dtype).itemsize
    budget, target_rows = _vmem_budget_and_target()
    if t_tile is None:
        target = _fit_rows_to_budget(target_rows, H, c_pad, x_bytes, out_bytes,
                                     mm_bytes, budget)
        t_tile = _choose_t_tile(T, target)
    n_t = -(-T // t_tile)                                      # cdiv
    T_pad = n_t * t_tile
    x_p = x if T_pad == T else jnp.pad(x, ((0, 0), (0, T_pad - T), (0, 0)))

    # ---- explicit VMEM limit ---------------------------------------------------
    vmem_est = (2 * t_tile * H * x_bytes            # x tiles (double-buffered)
                + 2 * t_tile * c_pad * out_bytes    # out tiles (double-buffered)
                + 2 * H * c_pad * mm_bytes          # W_lin (worst case: 2 buffers)
                + 4 * H * 4 + 4 * c_pad * 4)        # scale / bias
    vmem_limit = int(min(max(2 * vmem_est + (4 << 20), 16 << 20), budget))

    kernel = functools.partial(last_layer_kernel, mm_dtype=mm_dtype)

    def _call(single_buffer_weights):
        if single_buffer_weights:
            w_spec = pl.BlockSpec((H, c_pad), lambda b, t: (0, 0),
                                  pipeline_mode=pl.Buffered(1))
        else:
            w_spec = pl.BlockSpec((H, c_pad), lambda b, t: (0, 0))
        return pl.pallas_call(
            kernel,
            out_shape=jax.ShapeDtypeStruct((B, T_pad, c_pad), out_dtype),
            grid_spec=pltpu.PrefetchScalarGridSpec(
                num_scalar_prefetch=0,
                grid=(B, n_t),
                in_specs=[
                    pl.BlockSpec((1, t_tile, H), lambda b, t: (b, t, 0)),   # x
                    pl.BlockSpec((1, 1, H), lambda b, t: (b, 0, 0)),        # 1+scale
                    pl.BlockSpec((1, 1, c_pad), lambda b, t: (b, 0, 0)),    # shift@W + b
                    w_spec,                                                 # W_lin (padded)
                ],
                out_specs=pl.BlockSpec((1, t_tile, c_pad), lambda b, t: (b, t, 0)),
            ),
            compiler_params=pltpu.CompilerParams(
                dimension_semantics=("parallel", "parallel"),
                vmem_limit_bytes=vmem_limit),
        )(x_p, scale_p1, bias_b, params["w_lin_p"])

    try:
        out_p = _call(True)                 # single-buffered resident weight
    except Exception:
        out_p = _call(False)                # fallback if Buffered(1) unsupported

    if return_padded:
        return out_p if T_pad == T else out_p[:, :T, :]
    if T_pad == T and c_pad == C:
        return out_p                        # no slice copy when C % 128 == 0
    return out_p[:, :T, :C]


# ----------------------------------------------------------------------------- reference
def last_layer_reference(x, vec, w_mod, b_mod, w_lin, b_lin):
    """Pure-JAX reference matching the PyTorch forward."""
    silu = vec * jax.nn.sigmoid(vec)
    mod = silu @ w_mod + b_mod
    H = x.shape[-1]
    shift, scale = mod[:, :H], mod[:, H:]
    mean = jnp.mean(x, axis=-1, keepdims=True)
    var = jnp.mean((x - mean) ** 2, axis=-1, keepdims=True)
    xn = (x - mean) / jnp.sqrt(var + EPS)
    y = (1.0 + scale[:, None, :]) * xn + shift[:, None, :]
    return y @ w_lin + b_lin


# ----------------------------------------------------------------------------- main
if __name__ == "__main__":
    # Small shapes consistent with the module: B=2, T=8 tokens, hidden=32, out_channels=4
    B, T, H, C_out = 2, 8, 32, 4

    key = jax.random.PRNGKey(0)
    kx, kv, kwm, kbm, kwl, kbl = jax.random.split(key, 6)

    x = jax.random.normal(kx, (B, T, H), dtype=jnp.float32)
    vec = jax.random.normal(kv, (B, H), dtype=jnp.float32)

    # Deterministic synthetic parameters (shapes from the nn.Linear definitions).
    w_mod = 0.05 * jax.random.normal(kwm, (H, 2 * H), dtype=jnp.float32)   # Linear(H, 2H)
    b_mod = 0.05 * jax.random.normal(kbm, (2 * H,), dtype=jnp.float32)
    w_lin = 0.05 * jax.random.normal(kwl, (H, C_out), dtype=jnp.float32)   # Linear(H, C_out)
    b_lin = 0.05 * jax.random.normal(kbl, (C_out,), dtype=jnp.float32)

    ref = last_layer_reference(x, vec, w_mod, b_mod, w_lin, b_lin)

    # f32 matmul path: tight numerical check of the kernel itself.
    params_f32 = prepare_last_layer_params(w_mod, b_mod, w_lin, b_lin,
                                           use_bf16_matmul=False)
    out_f32 = last_layer_forward(params_f32, x, vec, out_dtype=jnp.float32)
    out_f32 = jax.block_until_ready(out_f32)
    assert out_f32.shape == (B, T, C_out)
    assert jnp.allclose(out_f32, ref, atol=1e-4, rtol=1e-4), "f32 path mismatch vs reference"

    # bf16 matmul + bf16 x ingest + bf16 output (production config): looser tolerance.
    params_bf16 = prepare_last_layer_params(w_mod, b_mod, w_lin, b_lin,
                                            use_bf16_matmul=True)
    out_bf16 = last_layer_forward(params_bf16, x.astype(jnp.bfloat16), vec,
                                  out_dtype=jnp.bfloat16)
    out_bf16 = jax.block_until_ready(out_bf16)
    assert out_bf16.shape == (B, T, C_out)
    assert jnp.allclose(out_bf16.astype(jnp.float32), ref, atol=3e-2, rtol=3e-2), \
        "bf16 path mismatch vs reference"

    print("KERNEL_OK")
</pallas_src>

<mosaic_0001>
module attributes {stable_mosaic.version = 11 : i64} {
  func.func @last_layer_kernel(%arg0: i32, %arg1: i32, %arg2: memref<1x8x32xf32, #tpu.memory_space<vmem>>, %arg3: memref<1x1x32xf32, #tpu.memory_space<vmem>>, %arg4: memref<1x1x128xf32, #tpu.memory_space<vmem>>, %arg5: memref<32x128xf32, #tpu.memory_space<vmem>>, %arg6: memref<1x8x128xf32, #tpu.memory_space<vmem>>) attributes {dimension_semantics = [#tpu.dimension_semantics<parallel>, #tpu.dimension_semantics<parallel>], iteration_bounds = array<i64: 2, 1>, scalar_prefetch = 0 : i64, scratch_operands = 0 : i64, tpu.core_type = #tpu.core_type<tc>, window_params = [{transform_indices = @transform_0, window_bounds = array<i64: 1, 8, 32>}, {transform_indices = @transform_1, window_bounds = array<i64: 1, 1, 32>}, {transform_indices = @transform_2, window_bounds = array<i64: 1, 1, 128>}, {pipeline_mode = #tpu.pipeline_mode<synchronous>, transform_indices = @transform_3, window_bounds = array<i64: 32, 128>}, {transform_indices = @transform_4, window_bounds = array<i64: 1, 8, 128>}]} {
    %c0 = arith.constant 0 : index
    %c0_0 = arith.constant 0 : index
    %c0_1 = arith.constant 0 : index
    %0 = vector.load %arg2[%c0, %c0_0, %c0_1] : memref<1x8x32xf32, #tpu.memory_space<vmem>>, vector<1x8x32xf32>
    %1 = vector.shape_cast %0 : vector<1x8x32xf32> to vector<8x32xf32>
    %cst = arith.constant dense<0.000000e+00> : vector<8xf32>
    %2 = vector.multi_reduction <add>, %1, %cst [1] : vector<8x32xf32> to vector<8xf32>
    %3 = vector.shape_cast %2 : vector<8xf32> to vector<8x1xf32>
    %cst_2 = arith.constant 3.200000e+01 : f32
    %4 = vector.broadcast %cst_2 : f32 to vector<8x1xf32>
    %5 = arith.divf %3, %4 : vector<8x1xf32>
    %6 = arith.mulf %1, %1 : vector<8x32xf32>
    %cst_3 = arith.constant dense<0.000000e+00> : vector<8xf32>
    %7 = vector.multi_reduction <add>, %6, %cst_3 [1] : vector<8x32xf32> to vector<8xf32>
    %8 = vector.shape_cast %7 : vector<8xf32> to vector<8x1xf32>
    %cst_4 = arith.constant 3.200000e+01 : f32
    %9 = vector.broadcast %cst_4 : f32 to vector<8x1xf32>
    %10 = arith.divf %8, %9 : vector<8x1xf32>
    %11 = arith.mulf %5, %5 : vector<8x1xf32>
    %12 = arith.subf %10, %11 : vector<8x1xf32>
    %cst_5 = arith.constant 0.000000e+00 : f32
    %13 = vector.broadcast %cst_5 : f32 to vector<8x1xf32>
    %14 = arith.maximumf %12, %13 : vector<8x1xf32>
    %15 = vector.broadcast %5 : vector<8x1xf32> to vector<8x32xf32>
    %16 = arith.subf %1, %15 : vector<8x32xf32>
    %cst_6 = arith.constant 9.99999997E-7 : f32
    %17 = vector.broadcast %cst_6 : f32 to vector<8x1xf32>
    %18 = arith.addf %14, %17 : vector<8x1xf32>
    %19 = math.rsqrt %18 : vector<8x1xf32>
    %20 = vector.broadcast %19 : vector<8x1xf32> to vector<8x32xf32>
    %21 = arith.mulf %16, %20 : vector<8x32xf32>
    %c0_7 = arith.constant 0 : index
    %c0_8 = arith.constant 0 : index
    %c0_9 = arith.constant 0 : index
    %22 = vector.load %arg3[%c0_7, %c0_8, %c0_9] : memref<1x1x32xf32, #tpu.memory_space<vmem>>, vector<1x1x32xf32>
    %23 = vector.shape_cast %22 : vector<1x1x32xf32> to vector<1x32xf32>
    %24 = vector.broadcast %23 : vector<1x32xf32> to vector<8x32xf32>
    %25 = arith.mulf %21, %24 : vector<8x32xf32>
    %c0_10 = arith.constant 0 : index
    %c0_11 = arith.constant 0 : index
    %26 = vector.load %arg5[%c0_10, %c0_11] : memref<32x128xf32, #tpu.memory_space<vmem>>, vector<32x128xf32>
    %cst_12 = arith.constant dense<0.000000e+00> : vector<8x128xf32>
    %27 = tpu.matmul %25, %26, %cst_12 {dimension_numbers = #tpu.dot_dimension_numbers<[1], [0], [0], [1], [0, 0, 1, 1], [], []>} : vector<8x32xf32>, vector<32x128xf32>, vector<8x128xf32> -> vector<8x128xf32>
    %c0_13 = arith.constant 0 : index
    %c0_14 = arith.constant 0 : index
    %c0_15 = arith.constant 0 : index
    %28 = vector.load %arg4[%c0_13, %c0_14, %c0_15] : memref<1x1x128xf32, #tpu.memory_space<vmem>>, vector<1x1x128xf32>
    %29 = vector.shape_cast %28 : vector<1x1x128xf32> to vector<1x128xf32>
    %30 = vector.broadcast %29 : vector<1x128xf32> to vector<8x128xf32>
    %31 = arith.addf %27, %30 : vector<8x128xf32>
    %c0_16 = arith.constant 0 : index
    %c0_17 = arith.constant 0 : index
    %c0_18 = arith.constant 0 : index
    %32 = vector.load %arg6[%c0_16, %c0_17, %c0_18] : memref<1x8x128xf32, #tpu.memory_space<vmem>>, vector<1x8x128xf32>
    %33 = vector.shape_cast %32 : vector<1x8x128xf32> to vector<8x128xf32>
    %34 = vector.shape_cast %31 : vector<8x128xf32> to vector<1x8x128xf32>
    tpu.vector_store %arg6[%c0_16, %c0_17, %c0_18], %34 {strides = array<i32>} : memref<1x8x128xf32, #tpu.memory_space<vmem>>, vector<1x8x128xf32>,
    return
  }
  func.func @transform_0(%arg0: i32, %arg1: i32) -> (i32, i32, i32) {
    %c0_i32 = arith.constant 0 : i32
    %c0_i32_0 = arith.constant 0 : i32
    return %arg0, %arg1, %c0_i32 : i32, i32, i32
  }
  func.func @transform_1(%arg0: i32, %arg1: i32) -> (i32, i32, i32) {
    %c0_i32 = arith.constant 0 : i32
    %c0_i32_0 = arith.constant 0 : i32
    %c0_i32_1 = arith.constant 0 : i32
    return %arg0, %c0_i32, %c0_i32_0 : i32, i32, i32
  }
  func.func @transform_2(%arg0: i32, %arg1: i32) -> (i32, i32, i32) {
    %c0_i32 = arith.constant 0 : i32
    %c0_i32_0 = arith.constant 0 : i32
    %c0_i32_1 = arith.constant 0 : i32
    return %arg0, %c0_i32, %c0_i32_0 : i32, i32, i32
  }
  func.func @transform_3(%arg0: i32, %arg1: i32) -> (i32, i32) {
    %c0_i32 = arith.constant 0 : i32
    %c0_i32_0 = arith.constant 0 : i32
    %c0_i32_1 = arith.constant 0 : i32
    return %c0_i32, %c0_i32_0 : i32, i32
  }
  func.func @transform_4(%arg0: i32, %arg1: i32) -> (i32, i32, i32) {
    %c0_i32 = arith.constant 0 : i32
    %c0_i32_0 = arith.constant 0 : i32
    return %arg0, %arg1, %c0_i32 : i32, i32, i32
  }
}

module attributes {stable_mosaic.version = 11 : i64} {
  func.func @last_layer_kernel(%arg0: i32, %arg1: i32, %arg2: memref<1x8x32xf32, #tpu.memory_space<vmem>>, %arg3: memref<1x1x32xf32, #tpu.memory_space<vmem>>, %arg4: memref<1x1x128xf32, #tpu.memory_space<vmem>>, %arg5: memref<32x128xf32, #tpu.memory_space<vmem>>, %arg6: memref<1x8x128xf32, #tpu.memory_space<vmem>>) attributes {dimension_semantics = [#tpu.dimension_semantics<parallel>, #tpu.dimension_semantics<parallel>], iteration_bounds = array<i64: 2, 1>, scalar_prefetch = 0 : i64, scratch_operands = 0 : i64, tpu.core_type = #tpu.core_type<tc>, window_params = [{transform_indices = @transform_0, window_bounds = array<i64: 1, 8, 32>}, {transform_indices = @transform_1, window_bounds = array<i64: 1, 1, 32>}, {transform_indices = @transform_2, window_bounds = array<i64: 1, 1, 128>}, {pipeline_mode = #tpu.pipeline_mode<synchronous>, transform_indices = @transform_3, window_bounds = array<i64: 32, 128>}, {transform_indices = @transform_4, window_bounds = array<i64: 1, 8, 128>}]} {
    %c0 = arith.constant 0 : index
    %c0_0 = arith.constant 0 : index
    %c0_1 = arith.constant 0 : index
    %0 = vector.load %arg2[%c0, %c0_0, %c0_1] : memref<1x8x32xf32, #tpu.memory_space<vmem>>, vector<1x8x32xf32>
    %1 = vector.shape_cast %0 : vector<1x8x32xf32> to vector<8x32xf32>
    %cst = arith.constant dense<0.000000e+00> : vector<8xf32>
    %2 = vector.multi_reduction <add>, %1, %cst [1] : vector<8x32xf32> to vector<8xf32>
    %3 = vector.shape_cast %2 : vector<8xf32> to vector<8x1xf32>
    %cst_2 = arith.constant 3.200000e+01 : f32
    %4 = vector.broadcast %cst_2 : f32 to vector<8x1xf32>
    %5 = arith.divf %3, %4 : vector<8x1xf32>
    %6 = arith.mulf %1, %1 : vector<8x32xf32>
    %cst_3 = arith.constant dense<0.000000e+00> : vector<8xf32>
    %7 = vector.multi_reduction <add>, %6, %cst_3 [1] : vector<8x32xf32> to vector<8xf32>
    %8 = vector.shape_cast %7 : vector<8xf32> to vector<8x1xf32>
    %cst_4 = arith.constant 3.200000e+01 : f32
    %9 = vector.broadcast %cst_4 : f32 to vector<8x1xf32>
    %10 = arith.divf %8, %9 : vector<8x1xf32>
    %11 = arith.mulf %5, %5 : vector<8x1xf32>
    %12 = arith.subf %10, %11 : vector<8x1xf32>
    %cst_5 = arith.constant 0.000000e+00 : f32
    %13 = vector.broadcast %cst_5 : f32 to vector<8x1xf32>
    %14 = arith.maximumf %12, %13 : vector<8x1xf32>
    %15 = vector.broadcast %5 : vector<8x1xf32> to vector<8x32xf32>
    %16 = arith.subf %1, %15 : vector<8x32xf32>
    %cst_6 = arith.constant 9.99999997E-7 : f32
    %17 = vector.broadcast %cst_6 : f32 to vector<8x1xf32>
    %18 = arith.addf %14, %17 : vector<8x1xf32>
    %19 = math.rsqrt %18 : vector<8x1xf32>
    %20 = vector.broadcast %19 : vector<8x1xf32> to vector<8x32xf32>
    %21 = arith.mulf %16, %20 : vector<8x32xf32>
    %c0_7 = arith.constant 0 : index
    %c0_8 = arith.constant 0 : index
    %c0_9 = arith.constant 0 : index
    %22 = vector.load %arg3[%c0_7, %c0_8, %c0_9] : memref<1x1x32xf32, #tpu.memory_space<vmem>>, vector<1x1x32xf32>
    %23 = vector.shape_cast %22 : vector<1x1x32xf32> to vector<1x32xf32>
    %24 = vector.broadcast %23 : vector<1x32xf32> to vector<8x32xf32>
    %25 = arith.mulf %21, %24 : vector<8x32xf32>
    %c0_10 = arith.constant 0 : index
    %c0_11 = arith.constant 0 : index
    %26 = vector.load %arg5[%c0_10, %c0_11] : memref<32x128xf32, #tpu.memory_space<vmem>>, vector<32x128xf32>
    %cst_12 = arith.constant dense<0.000000e+00> : vector<8x128xf32>
    %27 = tpu.matmul %25, %26, %cst_12 {dimension_numbers = #tpu.dot_dimension_numbers<[1], [0], [0], [1], [0, 0, 1, 1], [], []>} : vector<8x32xf32>, vector<32x128xf32>, vector<8x128xf32> -> vector<8x128xf32>
    %c0_13 = arith.constant 0 : index
    %c0_14 = arith.constant 0 : index
    %c0_15 = arith.constant 0 : index
    %28 = vector.load %arg4[%c0_13, %c0_14, %c0_15] : memref<1x1x128xf32, #tpu.memory_space<vmem>>, vector<1x1x128xf32>
    %29 = vector.shape_cast %28 : vector<1x1x128xf32> to vector<1x128xf32>
    %30 = vector.broadcast %29 : vector<1x128xf32> to vector<8x128xf32>
    %31 = arith.addf %27, %30 : vector<8x128xf32>
    %c0_16 = arith.constant 0 : index
    %c0_17 = arith.constant 0 : index
    %c0_18 = arith.constant 0 : index
    %32 = vector.load %arg6[%c0_16, %c0_17, %c0_18] : memref<1x8x128xf32, #tpu.memory_space<vmem>>, vector<1x8x128xf32>
    %33 = vector.shape_cast %32 : vector<1x8x128xf32> to vector<8x128xf32>
    %34 = vector.shape_cast %31 : vector<8x128xf32> to vector<1x8x128xf32>
    tpu.vector_store %arg6[%c0_16, %c0_17, %c0_18], %34 {strides = array<i32>} : memref<1x8x128xf32, #tpu.memory_space<vmem>>, vector<1x8x128xf32>,
    return
  }
  func.func @transform_0(%arg0: i32, %arg1: i32) -> (i32, i32, i32) {
    %c0_i32 = arith.constant 0 : i32
    %c0_i32_0 = arith.constant 0 : i32
    return %arg0, %arg1, %c0_i32 : i32, i32, i32
  }
  func.func @transform_1(%arg0: i32, %arg1: i32) -> (i32, i32, i32) {
    %c0_i32 = arith.constant 0 : i32
    %c0_i32_0 = arith.constant 0 : i32
    %c0_i32_1 = arith.constant 0 : i32
    return %arg0, %c0_i32, %c0_i32_0 : i32, i32, i32
  }
  func.func @transform_2(%arg0: i32, %arg1: i32) -> (i32, i32, i32) {
    %c0_i32 = arith.constant 0 : i32
    %c0_i32_0 = arith.constant 0 : i32
    %c0_i32_1 = arith.constant 0 : i32
    return %arg0, %c0_i32, %c0_i32_0 : i32, i32, i32
  }
  func.func @transform_3(%arg0: i32, %arg1: i32) -> (i32, i32) {
    %c0_i32 = arith.constant 0 : i32
    %c0_i32_0 = arith.constant 0 : i32
    %c0_i32_1 = arith.constant 0 : i32
    return %c0_i32, %c0_i32_0 : i32, i32
  }
  func.func @transform_4(%arg0: i32, %arg1: i32) -> (i32, i32, i32) {
    %c0_i32 = arith.constant 0 : i32
    %c0_i32_0 = arith.constant 0 : i32
    return %arg0, %arg1, %c0_i32 : i32, i32, i32
  }
}

</mosaic_0001>

<bundles_post_ra>
// kernel: tpu_custom_call.1
= control target key start
LH: loop header
LB: loop body
LE: loop exit
PB: predicated region body
PF: predicated region fallthrough
CT: control target
= control target key end

     0   :  { %s1063_s0 = inlined_call_operand.hbm [shape: f32[2,8,32], index: 0, kind: input, shape index: {}]   ;;  %s1064_s1 = inlined_call_operand.hbm [shape: f32[2,1,32], index: 1, kind: input, shape index: {}]   ;;  %s1065_s2 = inlined_call_operand.vmem [shape: f32[2,1,128], index: 2, kind: input, shape index: {}]   ;;  %s1066_s3 = inlined_call_operand.hbm [shape: f32[32,128], index: 3, kind: input, shape index: {}]   ;;  %s1067_s4 = inlined_call_operand.hbm [shape: f32[2,8,128], index: 4, kind: output, shape index: {}]  }
   0x1   :  { %1069 = sst [smem:[#allocation15_spill]] %s1063_s0 }
   0x2   :  { %1070 = sst [smem:[#allocation16_spill]] %s1066_s3 }
   0x3   :  { %9 = vsyncpa [#allocation3], 0 }
   0x4   :  { %11 = vsyncpa [#allocation3 + $0x1], 0 }
   0x5   :  { %12 = vsyncpa [#allocation6], 0 }
   0x6   :  { %14 = vsyncpa [#allocation6 + $0x1], 0 }
   0x7   :  { %15 = vsyncpa [#allocation4], 0 }
   0x8   :  { %17 = vsyncpa [#allocation4 + $0x1], 0  ;;  %s861_s15 = smov 0   ;;  %s863_s16 = smov 0  }
   0x9   :  { %s865_s17 = smov 0   ;;  %s867_s18 = smov 0  }
   0xa   :  { %s869_s19 = smov 0   ;;  %s871_s20 = smov 0  }
   0xb LB: > { %s892_s21 = sadd.s32 4294967295, %s826_s20   ;;  %s538_s22 = sadd.s32 4294967294, %s826_s20   ;;  %s826_s20 = sphi %s871_s20, %s23_s20   ;;  %s822_s19 = sphi %s869_s19, %s1090_s19   ;;  %s818_s18 = sphi %s867_s18, %s1089_s18   ;;  %s814_s17 = sphi %s865_s17, %s1088_s17   ;;  %s810_s16 = sphi %s863_s16, %s1087_s16   ;;  %s806_s15 = sphi %s861_s15, %s1086_s15  }
   0xc   : > { %p57_p0 = scmp.ne.s32.totalorder %s810_s16, %s806_s15  ;;  %p58_p1 = scmp.eq.s32.totalorder %s892_s21, 0 }
   0xd   : > { %p162_p3 = scmp.eq.s32.totalorder %s538_s22, 1  ;;  %p539_p5 = scmp.ge.s32.totalorder %s826_s20, 1 }
   0xe   : > { %p901_p4 = por %p58_p1, %p57_p0  ;;  %p169_p7 = scmp.lt.s32.totalorder %s826_s20, 3 }
   0xf   : > { %p906_p6 = por %p162_p3, %p57_p0  ;;  %s828_s26 = smov [#allocation7]  }
  0x10   : > { %p911_p8 = pnand %p539_p5, %p169_p7  ;;  %s181_s27 = sshll.u32 %s828_s26, 4  ;;  %s182_s27 = int_to_ptr.vmem [resolvable:$true] %s181_s27 }
  0x11   : > { %s1072_s24 = scalar_select %p906_p6, 1, 0 }
  0x12   : > { %p582_p9 = pneg %p911_p8  ;;  %p541_p10 = scmp.ge.s32.totalorder %s826_s20, 2 }
  0x13   : > { %s35_s29 = sadd.s32 1, %s822_s19  ;;  %s667_s30 = scalar_lea.vmem %s182_s27, 512 }
  0x14   : > { %p920_p11 = pnand %p582_p9, %p58_p1  ;;  %p668_p13 = scmp.ne.s32.totalorder %s182_s27, %s667_s30 }
  0x15   : > { %p675_p5 = scmp.lt.s32.totalorder %s182_s27, %s182_s27  ;;  %p676_p7 = scmp.lt.s32.totalorder %s667_s30, %s667_s30 }
  0x16   : > { %p658_p12 = pneg %p920_p11 }
  0x17   : > { %p677_p2 = por %p676_p7, %p675_p5 }
  0x18   : > { %p670_p0 = pnand %p668_p13, %p658_p12 }
  0x1a   : > { %p671_p3 = pneg %p670_p0 }
  0x1c   : > { %p678_p6 = pnand %p677_p2, %p671_p3 }
  0x1e   : > { %681 = shalt.err (!%p678_p6)
}
  0x1f   : > { %s829_s5 = smov 128   ;;  %s830_s6 = smov 8  }
  0x20   : > { %s1075_s3 = sld [smem:[#allocation16_spill]]  ;;  %p37_p2 = scmp.ge.s32.totalorder %s35_s29, 2 }
  0x21   : > { %s44_s9 = sadd.s32 1, %s814_s17  ;;  %p51_p6 = scmp.ne.s32.totalorder %s814_s17, %s810_s16 }
  0x22   : > { %p52_p9 = scmp.eq.s32.totalorder %s826_s20, 0  ;;  %s1092_s29 = smov (%p37_p2, %s35_s29), 0 }
  0x23   : > { %1076 = sst [smem:[#allocation13_spill]] %s1092_s29  ;;  %p1078_p13 = scmp.eq.s32.totalorder %s892_s21, 1 }
  0x24   : > { %p938_p12 = por %p52_p9, %p51_p6  ;;  %s39_s12 = ssub.s32 %s822_s19, %s1092_s29 }
  0x25   : > { %p944_p0 = por %p1078_p13, %p51_p6  ;;  %p42_p3 = scmp.eq.s32.totalorder %s39_s12, 0 }
  0x26   : > { %585 = dma.hbm_to_vmem [thread:$0]  (!%p920_p11), %s1075_s3, 512, %s182_s27, [#allocation6], %s829_s5, %s829_s5, %s830_s6  }
  0x27   : > { %p598_p11 = scmp.lt.s32.totalorder %s826_s20, 2  ;;  %s195_s13 = sand.u32 1, %s814_s17  }
  0x28   : > { %s542_s14 = sshll.u32 %s195_s13, 3  ;;  %s543_s26 = sshll.u32 %s822_s19, 7 }
  0x29   : > { %s953_s22 = scalar_select %p42_p3, %s814_s17, %s44_s9  }
  0x2a   : > { %s1081_s0 = sld [smem:[#allocation15_spill]]  ;;  %s199_s5 = scalar_lea.vmem [#allocation2], %s542_s14 }
  0x2b   : > { %1080 = sst [smem:[#allocation14_spill]] %s953_s22  ;;  %s207_s6 = sshll.u32 %s199_s5, 4  ;;  %s208_s6 = int_to_ptr.vmem [resolvable:$true] %s207_s6 }
  0x2c   : > { %p961_p5 = pnand %p598_p11, %p938_p12  ;;  %s214_s8 = sand.u32 1, %s826_s20  }
  0x2d   : > { %s196_s12 = scalar_lea.sflag [#allocation3], %s195_s13  ;;  %s695_s9 = scalar_lea.vmem %s208_s6, 128 }
  0x2e   : > { %p684_p7 = pneg %p961_p5  ;;  %p696_p2 = scmp.ne.s32.totalorder %s208_s6, %s695_s9 }
  0x2f   : > { %s831_s14 = smov [#allocation2]  }
  0x30   : > { %s205_s30 = scalar_lea.hbm %s1081_s0, %s543_s26  ;;  %p698_p6 = pnand %p696_p2, %p684_p7 }
  0x31   : > { %s700_s26 = sshll.u32 %s831_s14, 4  ;;  %s701_s26 = int_to_ptr.vmem [resolvable:$false] %s700_s26 }
  0x32   : > { %p699_p9 = pneg %p698_p6  ;;  %s702_s10 = scalar_lea.vmem %s701_s26, 256 }
  0x33   : > { %p703_p12 = scmp.lt.s32.totalorder %s208_s6, %s701_s26  ;;  %p704_p13 = scmp.lt.s32.totalorder %s702_s10, %s695_s9 }
  0x35   : > { %p705_p11 = por %p704_p13, %p703_p12 }
  0x37   : > { %p706_p3 = pnand %p705_p11, %p699_p9 }
  0x39   : > { %709 = shalt.err (!%p706_p3)
}
  0x3a   : > { %589 = dma.hbm_to_vmem [thread:$0]  (!%p961_p5), %s205_s30, 128, %s208_s6, %s196_s12  }
  0x3b   : > { %s544_s27 = sshll.u32 %s822_s19, 4  ;;  %s217_s28 = scalar_lea.vmem [#allocation5], %s195_s13 }
  0x3c   : > { %s224_s5 = sshll.u32 %s217_s28, 4  ;;  %s222_s29 = scalar_lea.hbm %s1064_s1, %s544_s27  ;;  %s225_s5 = int_to_ptr.vmem [resolvable:$true] %s224_s5 }
  0x3d   : > { %s215_s14 = scalar_lea.sflag [#allocation6], %s214_s8  ;;  %s723_s22 = scalar_lea.vmem %s225_s5, 16 }
  0x3e   : > { %p724_p2 = scmp.ne.s32.totalorder %s225_s5, %s723_s22  ;;  %s832_s9 = smov [#allocation5]  }
  0x3f   : > { %s728_s26 = sshll.u32 %s832_s9, 4  ;;  %s729_s26 = int_to_ptr.vmem [resolvable:$false] %s728_s26 }
  0x40   : > { %p726_p6 = pnand %p724_p2, %p684_p7  ;;  %s730_s10 = scalar_lea.vmem %s729_s26, 32 }
  0x41   : > { %p731_p12 = scmp.lt.s32.totalorder %s225_s5, %s729_s26  ;;  %p732_p13 = scmp.lt.s32.totalorder %s730_s10, %s723_s22 }
  0x42   : > { %p727_p9 = pneg %p726_p6 }
  0x43   : > { %p733_p11 = por %p732_p13, %p731_p12 }
  0x45   : > { %p734_p3 = pnand %p733_p11, %p727_p9 }
  0x47   : > { %737 = shalt.err (!%p734_p3)
}
  0x48   : > { %592 = dma.hbm_to_vmem [thread:$0]  (!%p961_p5), %s222_s29, 16, %s225_s5, %s215_s14  }
  0x49   : > { %239 = sbr.rel (%p911_p8) target bundleno = 462 (0x1ce), region = 36  ;;  %s985_s0 = sand.u32 (!%p911_p8), 1, %s810_s16  }
  0x4a   : > { %s546_s3 = sshll.u32 (!%p911_p8), %s985_s0, 3  ;;  %s242_s13 = scalar_lea.sflag (!%p911_p8), [#allocation3], %s985_s0 }
  0x4b   : > { %s245_s22 = scalar_lea.vmem (!%p911_p8), [#allocation2], %s546_s3 }
  0x4e   : > { %789 = dma.done.wait (%p901_p4), %s242_s13, 128  }
  0x4f   : > { %791 = vsyncadd (%p901_p4), %s242_s13, 4294967168  ;;  %s250_s25 = sand.u32 1, %s892_s21   ;;  %s253_s30 = scalar_lea.vmem [#allocation5], %s985_s0 }
  0x50   : > { %s251_s29 = scalar_lea.sflag [#allocation6], %s250_s25 }
  0x51   : > { %793 = dma.done.wait (%p901_p4), %s251_s29, 16  }
  0x52   : > { %795 = vsyncadd (%p901_p4), %s251_s29, 4294967280 }
  0x53   : > { %797 = dma.done.wait (%p58_p1), [#allocation6], 512  }
  0x54   : > { %799 = vsyncadd (%p58_p1), [#allocation6], 4294966784  ;;  %vm293_vm0 = vcmask 261120   ;;  %v292_v0 = vld [vmem:[%s245_s22] sm:$0xff]  ;;  %v833_v5 = vmov 0.0   ;;  %vm834_vm1 = vmmov 0  }
  0x55   : > { %v294_v1 = vsel %vm293_vm0, %v292_v0, 0.0  ;;  %v299_v2 = vmul.f32 %v292_v0, %v292_v0  ;;  %v322_v4 = vld [vmem:[#allocation7 + $0x18] sm:$0xff]  ;;  %561 = vmatprep.subr.mxu0 %v833_v5  ;;  %v321_v6 = vld [vmem:[#allocation7 + $0x10] sm:$0xff]  ;;  %569 = vmatprep.mubr.msk.f32.mxu0 %vm834_vm1, %v833_v5  ;;  %v320_v7 = vld [vmem:[#allocation7 + $0x8] sm:$0xff]  ;;  %p289_p1 = scmp.lt.s32.totalorder %s818_s18, 1  ;;  %s553_s8 = sshll.u32 %s818_s18, 7 }
  0x56   : > { %295 = vadd.xlane.f32.xlu0 %v294_v1  ;;  %562 = vmatpush3.msra.mxu0 %v322_v4  ;;  %v319_v8 = vld [vmem:[#allocation7] sm:$0xff]  ;;  %v549_v19 = vld [vmem:[%s253_s30] ss:$0 sm:$0xff]  ;;  %s288_s12 = scalar_lea.vmem [#allocation8], %s546_s3  ;;  %s1021_s14 = scalar_lea.hbm %s1067_s4, %s553_s8 }
  0x57   : > { %v300_v3 = vsel %vm293_vm0, %v299_v2, 0.0  ;;  %563 = vmatprep.subr.mxu0 %v833_v5  ;;  %s290_s21 = scalar_select %p289_p1, %s818_s18, 1 }
  0x58   : > { %564 = vmatpush3.msra.mxu0 %v321_v6  ;;  %s419_s27 = sshll.u32 %s288_s12, 4  ;;  %s405_s9 = scalar_lea.sflag [#allocation4], %s985_s0  ;;  %s420_s27 = int_to_ptr.vmem [resolvable:$true] %s419_s27 }
  0x59   : > { %565 = vmatprep.subr.mxu0 %v833_v5  ;;  %s291_s7 = scalar_lea.vmem %s1065_s2, %s290_s21  ;;  %s738_s26 = scalar_lea.vmem %s420_s27, 128 }
  0x5a   : > { %301 = vadd.xlane.f32.xlu0 %v300_v3  ;;  %566 = vmatpush3.msra.mxu0 %v320_v7  ;;  %v550_v22 = vld [vmem:[%s291_s7] ss:$0 sm:$0xff]  ;;  %p739_p4 = scmp.ne.s32.totalorder %s420_s27, %s738_s26  ;;  %s835_s18 = smov [#allocation8]  }
  0x5b   : > { %567 = vmatprep.subr.mxu0 %v833_v5  ;;  %s742_s10 = sshll.u32 %s835_s18, 4  ;;  %s743_s10 = int_to_ptr.vmem [resolvable:$false] %s742_s10 }
  0x5c   : > { %568 = vmatpush3.msra.mxu0 %v319_v8  ;;  %p740_p8 = pnand %p739_p4, %p944_p0  ;;  %s744_s3 = scalar_lea.vmem %s743_s10, 256 }
  0x5d   : > { %p745_p7 = scmp.lt.s32.totalorder %s420_s27, %s743_s10  ;;  %p746_p2 = scmp.lt.s32.totalorder %s744_s3, %s738_s26 }
  0x5e   : > { %p741_p5 = pneg %p740_p8 }
  0x5f   : > { %p747_p6 = por %p746_p2, %p745_p7 }
  0x61   : > { %p748_p9 = pnand %p747_p6, %p741_p5 }
  0xdf   : > { %v296_v9 = vpop.xlane.xlu0 %295 }
  0xe0   : > { %v298_v10 = vmul.f32 0.03125, %v296_v9 }
  0xe2   : > { %v304_v12 = vmul.f32 %v298_v10, %v298_v10  ;;  %v307_v17 = vsub.f32 %v292_v0, %v298_v10 }
  0xe3   : > { %v302_v11 = vpop.xlane.xlu0 %301 }
  0xe4   : > { %v303_v13 = vmul.f32 0.03125, %v302_v11 }
  0xe6   : > { %v305_v14 = vsub.f32 %v303_v13, %v304_v12 }
  0xe8   : > { %v306_v15 = vmax.f32 %v305_v14, 0.0 }
  0xea   : > { %v308_v16 = vadd.f32 1e-06, %v306_v15 }
  0xec   : > { %654 = vrsqrt.f32 %v308_v16 }
  0xf9   : > { %v655_v18 = vpop.eup %654 }
  0xfa   : > { %v310_v20 = vmul.f32 %v655_v18, %v307_v17 }
  0xfc   : > { %v318_v21 = vmul.f32 %v549_v19, %v310_v20 }
  0xfe   : > { %570 = vmatmul.mubr.msk.f32.vlgmr.msra.gmra.mxu0 %vm293_vm0, %v318_v21 }
 0x1be   : > { %v399_v23 = vpop.f32.mrf.mxu0 }
 0x1bf   : > { %v400_v24 = vadd.f32 %v550_v22, %v399_v23 }
 0x1c0   : > { %v571_v25 = vpop.f32.mrf.mxu0 }
 0x1c1   : > { %403 = vst [vmem:[%s288_s12] sm:$0xff] %v400_v24 }
 0x1c2   : > { %751 = shalt.err (!%p748_p9)
}
 0x1c3   : > { %s752_s13 = scalar_lea.hbm %s1021_s14, 128  ;;  %s756_s25 = scalar_lea.hbm %s1067_s4, 256 }
 0x1c4   : > { %p753_p12 = scmp.ne.s32.totalorder %s1021_s14, %s752_s13  ;;  %p757_p3 = scmp.lt.s32.totalorder %s1021_s14, %s1067_s4 }
 0x1c5   : > { %p758_p1 = scmp.lt.s32.totalorder %s756_s25, %s752_s13 }
 0x1c6   : > { %p754_p13 = pnand %p753_p12, %p944_p0 }
 0x1c7   : > { %p759_p4 = por %p758_p1, %p757_p3 }
 0x1c8   : > { %p755_p11 = pneg %p754_p13 }
 0x1ca   : > { %p760_p8 = pnand %p759_p4, %p755_p11 }
 0x1cc   : > { %763 = shalt.err (!%p760_p8)
}
 0x1cd   : > { %580 = dma.vmem_to_hbm [thread:$0]  (%p944_p0), %s420_s27, 128, %s1021_s14, %s405_s9  }
 0x1ce PF: > { %s431_s21 = sand.u32 1, %s806_s15   ;;  %p1083_p5 = scmp.ne.s32.totalorder %s1072_s24, 0 }
 0x1cf   : > { %s432_s23 = scalar_lea.sflag [#allocation4], %s431_s21 }
 0x1d0   : > { %p594_p7 = pnand %p541_p10, %p1083_p5 }
 0x1d2   : > { %p595_p2 = pneg %p594_p7 }
 0x1d4   : > { %801 = dma.done.wait (%p595_p2), %s432_s23, 128  }
 0x1d5   : > { %803 = vsyncadd (%p595_p2), %s432_s23, 4294967168  ;;  %s23_s20 = sadd.s32 1, %s826_s20   ;;  %s1084_s11 = sld [smem:[#allocation14_spill]] }
 0x1d6   : > { %p20_p6 = scmp.ge.s32.totalorder %s23_s20, 4   ;;  %s1085_s6 = sld [smem:[#allocation13_spill]] }
 0x1d7   : > { %s1086_s15 = smov %s810_s16  ;;  %s1087_s16 = smov %s814_s17 }
 0x1d8   : > { %s1089_s18 = smov %s822_s19  ;;  %22 = sbr.rel (!%p20_p6) target bundleno = 11 (0xb), region = 101 }
 0x1db   : > { %s1088_s17 = smov %s1084_s11 }
 0x1dc   : > { %s1090_s19 = smov %s1085_s6 }
 0x1dd   :  { %437 = vsyncpa [#allocation3], 1 }
 0x1de   :  { %439 = vsyncpa [#allocation3 + $0x1], 1 }
 0x1df   :  { %440 = vsyncpa [#allocation6], 1 }
 0x1e0   :  { %442 = vsyncpa [#allocation6 + $0x1], 1 }
 0x1e1   :  { %443 = vsyncpa [#allocation4], 1 }
 0x1e2   :  { %445 = vsyncpa [#allocation4 + $0x1], 1 }

// kernel: tpu_custom_call.1
= control target key start
LH: loop header
LB: loop body
LE: loop exit
PB: predicated region body
PF: predicated region fallthrough
CT: control target
= control target key end

     0   :  { %s1063_s0 = inlined_call_operand.hbm [shape: f32[2,8,32], index: 0, kind: input, shape index: {}]   ;;  %s1064_s1 = inlined_call_operand.hbm [shape: f32[2,1,32], index: 1, kind: input, shape index: {}]   ;;  %s1065_s2 = inlined_call_operand.vmem [shape: f32[2,1,128], index: 2, kind: input, shape index: {}]   ;;  %s1066_s3 = inlined_call_operand.hbm [shape: f32[32,128], index: 3, kind: input, shape index: {}]   ;;  %s1067_s4 = inlined_call_operand.hbm [shape: f32[2,8,128], index: 4, kind: output, shape index: {}]  }
   0x1   :  { %1069 = sst [smem:[#allocation15_spill]] %s1063_s0 }
   0x2   :  { %1070 = sst [smem:[#allocation16_spill]] %s1066_s3 }
   0x3   :  { %9 = vsyncpa [#allocation3], 0 }
   0x4   :  { %11 = vsyncpa [#allocation3 + $0x1], 0 }
   0x5   :  { %12 = vsyncpa [#allocation6], 0 }
   0x6   :  { %14 = vsyncpa [#allocation6 + $0x1], 0 }
   0x7   :  { %15 = vsyncpa [#allocation4], 0 }
   0x8   :  { %17 = vsyncpa [#allocation4 + $0x1], 0  ;;  %s861_s15 = smov 0   ;;  %s863_s16 = smov 0  }
   0x9   :  { %s865_s17 = smov 0   ;;  %s867_s18 = smov 0  }
   0xa   :  { %s869_s19 = smov 0   ;;  %s871_s20 = smov 0  }
   0xb LB: > { %s892_s21 = sadd.s32 4294967295, %s826_s20   ;;  %s538_s22 = sadd.s32 4294967294, %s826_s20   ;;  %s826_s20 = sphi %s871_s20, %s23_s20   ;;  %s822_s19 = sphi %s869_s19, %s1090_s19   ;;  %s818_s18 = sphi %s867_s18, %s1089_s18   ;;  %s814_s17 = sphi %s865_s17, %s1088_s17   ;;  %s810_s16 = sphi %s863_s16, %s1087_s16   ;;  %s806_s15 = sphi %s861_s15, %s1086_s15  }
   0xc   : > { %p57_p0 = scmp.ne.s32.totalorder %s810_s16, %s806_s15  ;;  %p58_p1 = scmp.eq.s32.totalorder %s892_s21, 0 }
   0xd   : > { %p162_p3 = scmp.eq.s32.totalorder %s538_s22, 1  ;;  %p539_p5 = scmp.ge.s32.totalorder %s826_s20, 1 }
   0xe   : > { %p901_p4 = por %p58_p1, %p57_p0  ;;  %p169_p7 = scmp.lt.s32.totalorder %s826_s20, 3 }
   0xf   : > { %p906_p6 = por %p162_p3, %p57_p0  ;;  %s828_s26 = smov [#allocation7]  }
  0x10   : > { %p911_p8 = pnand %p539_p5, %p169_p7  ;;  %s181_s27 = sshll.u32 %s828_s26, 4  ;;  %s182_s27 = int_to_ptr.vmem [resolvable:$true] %s181_s27 }
  0x11   : > { %s1072_s24 = scalar_select %p906_p6, 1, 0 }
  0x12   : > { %p582_p9 = pneg %p911_p8  ;;  %p541_p10 = scmp.ge.s32.totalorder %s826_s20, 2 }
  0x13   : > { %s35_s29 = sadd.s32 1, %s822_s19  ;;  %s667_s30 = scalar_lea.vmem %s182_s27, 512 }
  0x14   : > { %p920_p11 = pnand %p582_p9, %p58_p1  ;;  %p668_p13 = scmp.ne.s32.totalorder %s182_s27, %s667_s30 }
  0x15   : > { %p675_p5 = scmp.lt.s32.totalorder %s182_s27, %s182_s27  ;;  %p676_p7 = scmp.lt.s32.totalorder %s667_s30, %s667_s30 }
  0x16   : > { %p658_p12 = pneg %p920_p11 }
  0x17   : > { %p677_p2 = por %p676_p7, %p675_p5 }
  0x18   : > { %p670_p0 = pnand %p668_p13, %p658_p12 }
  0x1a   : > { %p671_p3 = pneg %p670_p0 }
  0x1c   : > { %p678_p6 = pnand %p677_p2, %p671_p3 }
  0x1e   : > { %681 = shalt.err (!%p678_p6)
}
  0x1f   : > { %s829_s5 = smov 128   ;;  %s830_s6 = smov 8  }
  0x20   : > { %s1075_s3 = sld [smem:[#allocation16_spill]]  ;;  %p37_p2 = scmp.ge.s32.totalorder %s35_s29, 2 }
  0x21   : > { %s44_s9 = sadd.s32 1, %s814_s17  ;;  %p51_p6 = scmp.ne.s32.totalorder %s814_s17, %s810_s16 }
  0x22   : > { %p52_p9 = scmp.eq.s32.totalorder %s826_s20, 0  ;;  %s1092_s29 = smov (%p37_p2, %s35_s29), 0 }
  0x23   : > { %1076 = sst [smem:[#allocation13_spill]] %s1092_s29  ;;  %p1078_p13 = scmp.eq.s32.totalorder %s892_s21, 1 }
  0x24   : > { %p938_p12 = por %p52_p9, %p51_p6  ;;  %s39_s12 = ssub.s32 %s822_s19, %s1092_s29 }
  0x25   : > { %p944_p0 = por %p1078_p13, %p51_p6  ;;  %p42_p3 = scmp.eq.s32.totalorder %s39_s12, 0 }
  0x26   : > { %585 = dma.hbm_to_vmem [thread:$0]  (!%p920_p11), %s1075_s3, 512, %s182_s27, [#allocation6], %s829_s5, %s829_s5, %s830_s6  }
  0x27   : > { %p598_p11 = scmp.lt.s32.totalorder %s826_s20, 2  ;;  %s195_s13 = sand.u32 1, %s814_s17  }
  0x28   : > { %s542_s14 = sshll.u32 %s195_s13, 3  ;;  %s543_s26 = sshll.u32 %s822_s19, 7 }
  0x29   : > { %s953_s22 = scalar_select %p42_p3, %s814_s17, %s44_s9  }
  0x2a   : > { %s1081_s0 = sld [smem:[#allocation15_spill]]  ;;  %s199_s5 = scalar_lea.vmem [#allocation2], %s542_s14 }
  0x2b   : > { %1080 = sst [smem:[#allocation14_spill]] %s953_s22  ;;  %s207_s6 = sshll.u32 %s199_s5, 4  ;;  %s208_s6 = int_to_ptr.vmem [resolvable:$true] %s207_s6 }
  0x2c   : > { %p961_p5 = pnand %p598_p11, %p938_p12  ;;  %s214_s8 = sand.u32 1, %s826_s20  }
  0x2d   : > { %s196_s12 = scalar_lea.sflag [#allocation3], %s195_s13  ;;  %s695_s9 = scalar_lea.vmem %s208_s6, 128 }
  0x2e   : > { %p684_p7 = pneg %p961_p5  ;;  %p696_p2 = scmp.ne.s32.totalorder %s208_s6, %s695_s9 }
  0x2f   : > { %s831_s14 = smov [#allocation2]  }
  0x30   : > { %s205_s30 = scalar_lea.hbm %s1081_s0, %s543_s26  ;;  %p698_p6 = pnand %p696_p2, %p684_p7 }
  0x31   : > { %s700_s26 = sshll.u32 %s831_s14, 4  ;;  %s701_s26 = int_to_ptr.vmem [resolvable:$false] %s700_s26 }
  0x32   : > { %p699_p9 = pneg %p698_p6  ;;  %s702_s10 = scalar_lea.vmem %s701_s26, 256 }
  0x33   : > { %p703_p12 = scmp.lt.s32.totalorder %s208_s6, %s701_s26  ;;  %p704_p13 = scmp.lt.s32.totalorder %s702_s10, %s695_s9 }
  0x35   : > { %p705_p11 = por %p704_p13, %p703_p12 }
  0x37   : > { %p706_p3 = pnand %p705_p11, %p699_p9 }
  0x39   : > { %709 = shalt.err (!%p706_p3)
}
  0x3a   : > { %589 = dma.hbm_to_vmem [thread:$0]  (!%p961_p5), %s205_s30, 128, %s208_s6, %s196_s12  }
  0x3b   : > { %s544_s27 = sshll.u32 %s822_s19, 4  ;;  %s217_s28 = scalar_lea.vmem [#allocation5], %s195_s13 }
  0x3c   : > { %s224_s5 = sshll.u32 %s217_s28, 4  ;;  %s222_s29 = scalar_lea.hbm %s1064_s1, %s544_s27  ;;  %s225_s5 = int_to_ptr.vmem [resolvable:$true] %s224_s5 }
  0x3d   : > { %s215_s14 = scalar_lea.sflag [#allocation6], %s214_s8  ;;  %s723_s22 = scalar_lea.vmem %s225_s5, 16 }
  0x3e   : > { %p724_p2 = scmp.ne.s32.totalorder %s225_s5, %s723_s22  ;;  %s832_s9 = smov [#allocation5]  }
  0x3f   : > { %s728_s26 = sshll.u32 %s832_s9, 4  ;;  %s729_s26 = int_to_ptr.vmem [resolvable:$false] %s728_s26 }
  0x40   : > { %p726_p6 = pnand %p724_p2, %p684_p7  ;;  %s730_s10 = scalar_lea.vmem %s729_s26, 32 }
  0x41   : > { %p731_p12 = scmp.lt.s32.totalorder %s225_s5, %s729_s26  ;;  %p732_p13 = scmp.lt.s32.totalorder %s730_s10, %s723_s22 }
  0x42   : > { %p727_p9 = pneg %p726_p6 }
  0x43   : > { %p733_p11 = por %p732_p13, %p731_p12 }
  0x45   : > { %p734_p3 = pnand %p733_p11, %p727_p9 }
  0x47   : > { %737 = shalt.err (!%p734_p3)
}
  0x48   : > { %592 = dma.hbm_to_vmem [thread:$0]  (!%p961_p5), %s222_s29, 16, %s225_s5, %s215_s14  }
  0x49   : > { %239 = sbr.rel (%p911_p8) target bundleno = 462 (0x1ce), region = 36  ;;  %s985_s0 = sand.u32 (!%p911_p8), 1, %s810_s16  }
  0x4a   : > { %s546_s3 = sshll.u32 (!%p911_p8), %s985_s0, 3  ;;  %s242_s13 = scalar_lea.sflag (!%p911_p8), [#allocation3], %s985_s0 }
  0x4b   : > { %s245_s22 = scalar_lea.vmem (!%p911_p8), [#allocation2], %s546_s3 }
  0x4e   : > { %789 = dma.done.wait (%p901_p4), %s242_s13, 128  }
  0x4f   : > { %791 = vsyncadd (%p901_p4), %s242_s13, 4294967168  ;;  %s250_s25 = sand.u32 1, %s892_s21   ;;  %s253_s30 = scalar_lea.vmem [#allocation5], %s985_s0 }
  0x50   : > { %s251_s29 = scalar_lea.sflag [#allocation6], %s250_s25 }
  0x51   : > { %793 = dma.done.wait (%p901_p4), %s251_s29, 16  }
  0x52   : > { %795 = vsyncadd (%p901_p4), %s251_s29, 4294967280 }
  0x53   : > { %797 = dma.done.wait (%p58_p1), [#allocation6], 512  }
  0x54   : > { %799 = vsyncadd (%p58_p1), [#allocation6], 4294966784  ;;  %vm293_vm0 = vcmask 261120   ;;  %v292_v0 = vld [vmem:[%s245_s22] sm:$0xff]  ;;  %v833_v5 = vmov 0.0   ;;  %vm834_vm1 = vmmov 0  }
  0x55   : > { %v294_v1 = vsel %vm293_vm0, %v292_v0, 0.0  ;;  %v299_v2 = vmul.f32 %v292_v0, %v292_v0  ;;  %v322_v4 = vld [vmem:[#allocation7 + $0x18] sm:$0xff]  ;;  %561 = vmatprep.subr.mxu0 %v833_v5  ;;  %v321_v6 = vld [vmem:[#allocation7 + $0x10] sm:$0xff]  ;;  %569 = vmatprep.mubr.msk.f32.mxu0 %vm834_vm1, %v833_v5  ;;  %v320_v7 = vld [vmem:[#allocation7 + $0x8] sm:$0xff]  ;;  %p289_p1 = scmp.lt.s32.totalorder %s818_s18, 1  ;;  %s553_s8 = sshll.u32 %s818_s18, 7 }
  0x56   : > { %295 = vadd.xlane.f32.xlu0 %v294_v1  ;;  %562 = vmatpush3.msra.mxu0 %v322_v4  ;;  %v319_v8 = vld [vmem:[#allocation7] sm:$0xff]  ;;  %v549_v19 = vld [vmem:[%s253_s30] ss:$0 sm:$0xff]  ;;  %s288_s12 = scalar_lea.vmem [#allocation8], %s546_s3  ;;  %s1021_s14 = scalar_lea.hbm %s1067_s4, %s553_s8 }
  0x57   : > { %v300_v3 = vsel %vm293_vm0, %v299_v2, 0.0  ;;  %563 = vmatprep.subr.mxu0 %v833_v5  ;;  %s290_s21 = scalar_select %p289_p1, %s818_s18, 1 }
  0x58   : > { %564 = vmatpush3.msra.mxu0 %v321_v6  ;;  %s419_s27 = sshll.u32 %s288_s12, 4  ;;  %s405_s9 = scalar_lea.sflag [#allocation4], %s985_s0  ;;  %s420_s27 = int_to_ptr.vmem [resolvable:$true] %s419_s27 }
  0x59   : > { %565 = vmatprep.subr.mxu0 %v833_v5  ;;  %s291_s7 = scalar_lea.vmem %s1065_s2, %s290_s21  ;;  %s738_s26 = scalar_lea.vmem %s420_s27, 128 }
  0x5a   : > { %301 = vadd.xlane.f32.xlu0 %v300_v3  ;;  %566 = vmatpush3.msra.mxu0 %v320_v7  ;;  %v550_v22 = vld [vmem:[%s291_s7] ss:$0 sm:$0xff]  ;;  %p739_p4 = scmp.ne.s32.totalorder %s420_s27, %s738_s26  ;;  %s835_s18 = smov [#allocation8]  }
  0x5b   : > { %567 = vmatprep.subr.mxu0 %v833_v5  ;;  %s742_s10 = sshll.u32 %s835_s18, 4  ;;  %s743_s10 = int_to_ptr.vmem [resolvable:$false] %s742_s10 }
  0x5c   : > { %568 = vmatpush3.msra.mxu0 %v319_v8  ;;  %p740_p8 = pnand %p739_p4, %p944_p0  ;;  %s744_s3 = scalar_lea.vmem %s743_s10, 256 }
  0x5d   : > { %p745_p7 = scmp.lt.s32.totalorder %s420_s27, %s743_s10  ;;  %p746_p2 = scmp.lt.s32.totalorder %s744_s3, %s738_s26 }
  0x5e   : > { %p741_p5 = pneg %p740_p8 }
  0x5f   : > { %p747_p6 = por %p746_p2, %p745_p7 }
  0x61   : > { %p748_p9 = pnand %p747_p6, %p741_p5 }
  0xdf   : > { %v296_v9 = vpop.xlane.xlu0 %295 }
  0xe0   : > { %v298_v10 = vmul.f32 0.03125, %v296_v9 }
  0xe2   : > { %v304_v12 = vmul.f32 %v298_v10, %v298_v10  ;;  %v307_v17 = vsub.f32 %v292_v0, %v298_v10 }
  0xe3   : > { %v302_v11 = vpop.xlane.xlu0 %301 }
  0xe4   : > { %v303_v13 = vmul.f32 0.03125, %v302_v11 }
  0xe6   : > { %v305_v14 = vsub.f32 %v303_v13, %v304_v12 }
  0xe8   : > { %v306_v15 = vmax.f32 %v305_v14, 0.0 }
  0xea   : > { %v308_v16 = vadd.f32 1e-06, %v306_v15 }
  0xec   : > { %654 = vrsqrt.f32 %v308_v16 }
  0xf9   : > { %v655_v18 = vpop.eup %654 }
  0xfa   : > { %v310_v20 = vmul.f32 %v655_v18, %v307_v17 }
  0xfc   : > { %v318_v21 = vmul.f32 %v549_v19, %v310_v20 }
  0xfe   : > { %570 = vmatmul.mubr.msk.f32.vlgmr.msra.gmra.mxu0 %vm293_vm0, %v318_v21 }
 0x1be   : > { %v399_v23 = vpop.f32.mrf.mxu0 }
 0x1bf   : > { %v400_v24 = vadd.f32 %v550_v22, %v399_v23 }
 0x1c0   : > { %v571_v25 = vpop.f32.mrf.mxu0 }
 0x1c1   : > { %403 = vst [vmem:[%s288_s12] sm:$0xff] %v400_v24 }
 0x1c2   : > { %751 = shalt.err (!%p748_p9)
}
 0x1c3   : > { %s752_s13 = scalar_lea.hbm %s1021_s14, 128  ;;  %s756_s25 = scalar_lea.hbm %s1067_s4, 256 }
 0x1c4   : > { %p753_p12 = scmp.ne.s32.totalorder %s1021_s14, %s752_s13  ;;  %p757_p3 = scmp.lt.s32.totalorder %s1021_s14, %s1067_s4 }
 0x1c5   : > { %p758_p1 = scmp.lt.s32.totalorder %s756_s25, %s752_s13 }
 0x1c6   : > { %p754_p13 = pnand %p753_p12, %p944_p0 }
 0x1c7   : > { %p759_p4 = por %p758_p1, %p757_p3 }
 0x1c8   : > { %p755_p11 = pneg %p754_p13 }
 0x1ca   : > { %p760_p8 = pnand %p759_p4, %p755_p11 }
 0x1cc   : > { %763 = shalt.err (!%p760_p8)
}
 0x1cd   : > { %580 = dma.vmem_to_hbm [thread:$0]  (%p944_p0), %s420_s27, 128, %s1021_s14, %s405_s9  }
 0x1ce PF: > { %s431_s21 = sand.u32 1, %s806_s15   ;;  %p1083_p5 = scmp.ne.s32.totalorder %s1072_s24, 0 }
 0x1cf   : > { %s432_s23 = scalar_lea.sflag [#allocation4], %s431_s21 }
 0x1d0   : > { %p594_p7 = pnand %p541_p10, %p1083_p5 }
 0x1d2   : > { %p595_p2 = pneg %p594_p7 }
 0x1d4   : > { %801 = dma.done.wait (%p595_p2), %s432_s23, 128  }
 0x1d5   : > { %803 = vsyncadd (%p595_p2), %s432_s23, 4294967168  ;;  %s23_s20 = sadd.s32 1, %s826_s20   ;;  %s1084_s11 = sld [smem:[#allocation14_spill]] }
 0x1d6   : > { %p20_p6 = scmp.ge.s32.totalorder %s23_s20, 4   ;;  %s1085_s6 = sld [smem:[#allocation13_spill]] }
 0x1d7   : > { %s1086_s15 = smov %s810_s16  ;;  %s1087_s16 = smov %s814_s17 }
 0x1d8   : > { %s1089_s18 = smov %s822_s19  ;;  %22 = sbr.rel (!%p20_p6) target bundleno = 11 (0xb), region = 101 }
 0x1db   : > { %s1088_s17 = smov %s1084_s11 }
 0x1dc   : > { %s1090_s19 = smov %s1085_s6 }
 0x1dd   :  { %437 = vsyncpa [#allocation3], 1 }
 0x1de   :  { %439 = vsyncpa [#allocation3 + $0x1], 1 }
 0x1df   :  { %440 = vsyncpa [#allocation6], 1 }
 0x1e0   :  { %442 = vsyncpa [#allocation6 + $0x1], 1 }
 0x1e1   :  { %443 = vsyncpa [#allocation4], 1 }
 0x1e2   :  { %445 = vsyncpa [#allocation4 + $0x1], 1 }

</bundles_post_ra>
